<compile_context>
chip_gen: v7x
topology: tpu7x:2x2x1
jax: 0.10.0
libtpu: 0.0.40
codegen_flags: <defaults>
</compile_context>

<pallas_src>
import math

import jax
import jax.numpy as jnp
from jax.experimental import pallas as pl
from jax.experimental.pallas import tpu as pltpu

_NCLS = 4            # estimator emits 4 class probabilities (softmax dim=1)
_NCLS_PAD = 8        # padded to a sublane multiple; pad rows -> prob == 0
_INV_LN2 = 1.0 / math.log(2.0)
_ENT_EPS = 1e-10
_BN_EPS = 1e-5


def _entropy_kernel(x_ref, pa_ref, w1_ref, sc1_ref, sh1_ref, w2_ref, b2_ref,
                    thr_ref, cm_ref):
    """One (batch, spatial-tile) block.  Spatial pixels are the lane axis.

    x_ref : (1, C, T)       input features (native dtype)
    pa_ref: (1, 2, T)       row 0 = previous cumulative entropy, row 1 = active (0/1)
    thr_ref: (1,) SMEM      threshold scalar
    cm_ref: (1, 2, T) out   row 0 = new cumulative entropy,      row 1 = new mask (0/1)
    """
    x = x_ref[0]                                   # (C, T), lanes = pixels
    pa = pa_ref[0]                                 # (2, T)
    prev = pa[0:1, :]                              # (1, T)
    active = pa[1:2, :]                            # (1, T)
    thr = thr_ref[0]

    # --- entropy estimator: 1x1 conv (MXU, x-native dtype) -> folded BN -> ReLU ---
    hid = jnp.dot(w1_ref[...], x, preferred_element_type=jnp.float32)     # (C_hid, T)
    hid = jnp.maximum(hid * sc1_ref[...] + sh1_ref[...], 0.0)

    # --- 1x1 conv to (padded) class logits; pad rows carry bias -1e30 (finite!) ---
    logits = jnp.dot(w2_ref[...], hid, preferred_element_type=jnp.float32) + b2_ref[...]

    # --- softmax entropy in logsumexp form (bits):
    #       H = (log Z - sum(e * (l - m)) / Z) / ln 2,  e = exp(l - m), Z = sum e.
    #     Pad rows: e == 0 and (l - m) stays finite (-1e30ish), so they add 0.
    m = jnp.max(logits, axis=0, keepdims=True)     # (1, T)
    shifted = logits - m
    e = jnp.exp(shifted)
    z = jnp.sum(e, axis=0, keepdims=True)
    inv_z = pl.reciprocal(z, approx=True)          # EUP slot; tolerance absorbs error
    ent = (jnp.log(z)
           - jnp.sum(e * shifted, axis=0, keepdims=True) * inv_z) * _INV_LN2

    cumul = prev + ent
    new_mask = jnp.logical_and(cumul < thr, active > 0.5)

    cm_ref[0, 0:1, :] = cumul
    cm_ref[0, 1:2, :] = new_mask.astype(jnp.float32)


def _pick_lane_tile(hw_pad, batch):
    """Largest VMEM-safe lane tile dividing hw_pad, preferring >=4 grid steps
    (keeps both v7x TensorCores fed) but never shrinking below 512 lanes."""
    cands = [t for t in (2048, 1024, 512, 256, 128) if hw_pad % t == 0]
    if not cands:
        return hw_pad          # hw_pad is always a multiple of 128 -> unreachable
    for t in cands:
        if batch * (hw_pad // t) >= 4 or t <= 512:
            return t
    return cands[-1]


def entropy_based_early_stopping(x, params, prev_entropy=None, prev_mask=None,
                                 *, threshold=0.9, lane_tile=None):
    """x: (B, C, H, W) (NCHW, like PyTorch; any float dtype).
    Returns (x_out, new_active_mask(bool), cumul_entropy(f32)), all NCHW."""
    B, C, H, W = x.shape
    HW = H * W
    C_hid = params["w1"].shape[0]

    # ---- prev_entropy / prev_mask defaulting & nearest resize (wrapper glue) ----
    if prev_entropy is None:
        cum0 = jnp.zeros((B, 1, H, W), jnp.float32)
    elif prev_entropy.shape[2:] != (H, W):
        cum0 = jax.image.resize(prev_entropy.astype(jnp.float32), (B, 1, H, W),
                                method="nearest")
    else:
        cum0 = prev_entropy.astype(jnp.float32)

    if prev_mask is None:
        active = jnp.ones((B, 1, H, W), jnp.float32)
    elif prev_mask.shape[2:] != (H, W):
        active = jax.image.resize(prev_mask.astype(jnp.float32), (B, 1, H, W),
                                  method="nearest")
    else:
        active = prev_mask.astype(jnp.float32)
    active_bool = active > 0.5

    # ---- fold eval-mode BatchNorm into per-channel scale/shift; pad classes ----
    w1m = params["w1"][:, :, 0, 0].astype(x.dtype)            # MXU runs in x's dtype
    sc1v = (params["bn_g"] / jnp.sqrt(params["bn_v"] + _BN_EPS)).astype(jnp.float32)
    sh1v = ((params["b1"] - params["bn_m"]) * sc1v + params["bn_b"]).astype(jnp.float32)
    sc1 = sc1v.reshape(C_hid, 1)
    sh1 = sh1v.reshape(C_hid, 1)
    w2m = jnp.zeros((_NCLS_PAD, C_hid), jnp.float32).at[:_NCLS].set(
        params["w2"][:, :, 0, 0].astype(jnp.float32))
    b2 = jnp.full((_NCLS_PAD, 1), -1e30, jnp.float32).at[:_NCLS, 0].set(
        params["b2"].astype(jnp.float32))

    # ---- lane-dense flattening: NCHW -> (B, C, HW); pack the skinny streams ----
    x3 = x.reshape(B, C, HW)                                   # native dtype, no f32 copy
    pa3 = jnp.concatenate([cum0.reshape(B, 1, HW), active.reshape(B, 1, HW)], axis=1)

    # Pad the spatial axis to a lane multiple so tiles stay bounded & lane-dense.
    hw_pad = HW if HW % 128 == 0 else ((HW + 127) // 128) * 128
    if hw_pad != HW:
        x3 = jnp.pad(x3, ((0, 0), (0, 0), (0, hw_pad - HW)))
        pa3 = jnp.pad(pa3, ((0, 0), (0, 0), (0, hw_pad - HW)))

    if lane_tile is None:
        lane_tile = _pick_lane_tile(hw_pad, B)
    assert hw_pad % lane_tile == 0
    grid = (B, hw_pad // lane_tile)

    thr_arr = jnp.asarray([threshold], jnp.float32)            # SMEM scalar

    row = lambda c: pl.BlockSpec((1, c, lane_tile), lambda b, t: (b, 0, t))
    rep = lambda shape: pl.BlockSpec(shape, lambda b, t: (0, 0))

    cm3 = pl.pallas_call(
        _entropy_kernel,
        grid=grid,
        in_specs=[row(C), row(2),
                  rep((C_hid, C)), rep((C_hid, 1)), rep((C_hid, 1)),
                  rep((_NCLS_PAD, C_hid)), rep((_NCLS_PAD, 1)),
                  pl.BlockSpec(memory_space=pltpu.MemorySpace.SMEM)],
        out_specs=row(2),
        out_shape=jax.ShapeDtypeStruct((B, 2, hw_pad), jnp.float32),
        compiler_params=pltpu.CompilerParams(
            dimension_semantics=("parallel", "parallel")),
    )(x3, pa3, w1m, sc1, sh1, w2m, b2, thr_arr)

    cm = cm3[:, :, :HW].reshape(B, 2, H, W)
    cumul = cm[:, 0:1]
    new_mask = cm[:, 1:2] > 0.5

    # PyTorch's data-dependent `if not torch.all(new==old)` branch (values only):
    # when anything changed, the forward value reduces exactly to x * old_active.
    changed = jnp.any(new_mask != active_bool)
    x_out = jnp.where(changed, x * active.astype(x.dtype), x)
    return x_out, new_mask, cumul


def reference(x, params, prev_entropy=None, prev_mask=None, *, threshold=0.9):
    """Plain-JAX mirror of the PyTorch forward (eval-mode BatchNorm)."""
    B, C, H, W = x.shape
    if prev_entropy is None:
        cum0 = jnp.zeros((B, 1, H, W), jnp.float32)
    elif prev_entropy.shape[2:] != (H, W):
        cum0 = jax.image.resize(prev_entropy.astype(jnp.float32), (B, 1, H, W),
                                method="nearest")
    else:
        cum0 = prev_entropy.astype(jnp.float32)
    if prev_mask is None:
        active = jnp.ones((B, 1, H, W), bool)
    elif prev_mask.shape[2:] != (H, W):
        active = jax.image.resize(prev_mask.astype(jnp.float32), (B, 1, H, W),
                                  method="nearest") > 0.5
    else:
        active = prev_mask.astype(bool)

    def per_chan(v):
        return v[None, :, None, None]

    w1 = params["w1"][:, :, 0, 0]
    hid = jnp.einsum("oc,bchw->bohw", w1, x) + per_chan(params["b1"])
    hid = (hid - per_chan(params["bn_m"])) / jnp.sqrt(per_chan(params["bn_v"]) + _BN_EPS) \
        * per_chan(params["bn_g"]) + per_chan(params["bn_b"])
    hid = jnp.maximum(hid, 0.0)
    w2 = params["w2"][:, :, 0, 0]
    logits = jnp.einsum("oc,bchw->bohw", w2, hid) + per_chan(params["b2"])
    probs = jax.nn.softmax(logits, axis=1)
    ent = -jnp.sum(probs * jnp.log2(probs + _ENT_EPS), axis=1, keepdims=True)
    cumul = cum0 + ent
    new_mask = (cumul < threshold) & active

    changed = jnp.any(new_mask != active)
    af = active.astype(x.dtype)
    nf = new_mask.astype(x.dtype)
    x_masked = x * nf + (x * af) * (1.0 - nf)
    x_out = jnp.where(changed, x_masked, x)
    return x_out, new_mask, cumul


def init_params(key, c_in):
    c_hid = c_in // 2
    ks = jax.random.split(key, 8)
    n = lambda k, shape: 0.1 * jax.random.normal(k, shape, jnp.float32)
    u = lambda k, shape, lo, hi: jax.random.uniform(k, shape, jnp.float32, lo, hi)
    return {
        # 1x1 conv (C -> C//2) + BatchNorm
        "w1": n(ks[0], (c_hid, c_in, 1, 1)), "b1": n(ks[1], (c_hid,)),
        "bn_g": u(ks[2], (c_hid,), 0.5, 1.5), "bn_b": n(ks[3], (c_hid,)),
        "bn_m": n(ks[4], (c_hid,)), "bn_v": u(ks[5], (c_hid,), 0.5, 1.5),
        # 1x1 conv (C//2 -> 4)
        "w2": n(ks[6], (_NCLS, c_hid, 1, 1)), "b2": n(ks[7], (_NCLS,)),
    }


def _check_mask(mask, ref_mask, cumul, threshold):
    # Tolerate mask flips only when cumul sits near the threshold boundary
    # (float-roundoff / approx-reciprocal territory).
    mism = mask != ref_mask
    near = jnp.abs(cumul - threshold) < 5e-3
    assert bool(jnp.all(jnp.logical_or(~mism, near)))


if __name__ == "__main__":
    key = jax.random.PRNGKey(0)
    k_x, k_p, k_e = jax.random.split(key, 3)

    B, C, H, W = 2, 16, 16, 16            # channel_dim=16 (module default)
    x = jax.random.normal(k_x, (B, C, H, W), jnp.float32)
    params = init_params(k_p, C)

    # ---- call 1: defaults (prev_entropy=None, prev_mask=None), threshold=0.9 ----
    out1, mask1, cum1 = entropy_based_early_stopping(x, params, threshold=0.9)
    jax.block_until_ready((out1, mask1, cum1))
    r_out1, r_mask1, r_cum1 = reference(x, params, threshold=0.9)
    assert out1.shape == (B, C, H, W)
    assert mask1.shape == (B, 1, H, W) and cum1.shape == (B, 1, H, W)
    assert jnp.allclose(cum1, r_cum1, atol=3e-3, rtol=1e-3)
    assert jnp.allclose(out1, r_out1, atol=1e-5, rtol=1e-5)
    _check_mask(mask1, r_mask1, cum1, 0.9)

    # ---- call 2: non-trivial prev entropy + checkerboard prev mask (exercises gating) ----
    prev_ent = 0.5 * jax.random.uniform(k_e, (B, 1, H, W), jnp.float32)
    cb = ((jnp.arange(H)[:, None] + jnp.arange(W)[None, :]) % 2) == 0
    prev_mask = jnp.broadcast_to(cb[None, None], (B, 1, H, W))
    thr2 = 2.3
    out2, mask2, cum2 = entropy_based_early_stopping(
        x, params, prev_ent, prev_mask, threshold=thr2)
    jax.block_until_ready((out2, mask2, cum2))
    r_out2, r_mask2, r_cum2 = reference(x, params, prev_ent, prev_mask, threshold=thr2)
    assert jnp.allclose(cum2, r_cum2, atol=3e-3, rtol=1e-3)
    assert jnp.allclose(out2, r_out2, atol=1e-5, rtol=1e-5)
    _check_mask(mask2, r_mask2, cum2, thr2)

    print("KERNEL_OK")
</pallas_src>

<mosaic_0001>
module attributes {stable_mosaic.version = 11 : i64} {
  func.func @_entropy_kernel(%arg0: i32, %arg1: i32, %arg2: memref<1x16x256xf32, #tpu.memory_space<vmem>>, %arg3: memref<1x2x256xf32, #tpu.memory_space<vmem>>, %arg4: memref<8x16xf32, #tpu.memory_space<vmem>>, %arg5: memref<8x1xf32, #tpu.memory_space<vmem>>, %arg6: memref<8x1xf32, #tpu.memory_space<vmem>>, %arg7: memref<8x8xf32, #tpu.memory_space<vmem>>, %arg8: memref<8x1xf32, #tpu.memory_space<vmem>>, %arg9: memref<1xf32, #tpu.memory_space<smem>>, %arg10: memref<1x2x256xf32, #tpu.memory_space<vmem>>) attributes {dimension_semantics = [#tpu.dimension_semantics<parallel>, #tpu.dimension_semantics<parallel>], iteration_bounds = array<i64: 2, 1>, scalar_prefetch = 0 : i64, scratch_operands = 0 : i64, tpu.core_type = #tpu.core_type<tc>, window_params = [{transform_indices = @transform_0, window_bounds = array<i64: 1, 16, 256>}, {transform_indices = @transform_1, window_bounds = array<i64: 1, 2, 256>}, {pipeline_mode = #tpu.pipeline_mode<synchronous>, transform_indices = @transform_2, window_bounds = array<i64: 8, 16>}, {pipeline_mode = #tpu.pipeline_mode<synchronous>, transform_indices = @transform_3, window_bounds = array<i64: 8, 1>}, {pipeline_mode = #tpu.pipeline_mode<synchronous>, transform_indices = @transform_4, window_bounds = array<i64: 8, 1>}, {pipeline_mode = #tpu.pipeline_mode<synchronous>, transform_indices = @transform_5, window_bounds = array<i64: 8, 8>}, {pipeline_mode = #tpu.pipeline_mode<synchronous>, transform_indices = @transform_6, window_bounds = array<i64: 8, 1>}, {transform_indices = @transform_7, window_bounds = array<i64: 1>}, {transform_indices = @transform_8, window_bounds = array<i64: 1, 2, 256>}]} {
    %c0 = arith.constant 0 : index
    %c0_0 = arith.constant 0 : index
    %c0_1 = arith.constant 0 : index
    %0 = vector.load %arg2[%c0, %c0_0, %c0_1] : memref<1x16x256xf32, #tpu.memory_space<vmem>>, vector<1x16x256xf32>
    %1 = vector.shape_cast %0 : vector<1x16x256xf32> to vector<16x256xf32>
    %c0_2 = arith.constant 0 : index
    %c0_3 = arith.constant 0 : index
    %c0_4 = arith.constant 0 : index
    %2 = vector.load %arg3[%c0_2, %c0_3, %c0_4] : memref<1x2x256xf32, #tpu.memory_space<vmem>>, vector<1x2x256xf32>
    %3 = vector.shape_cast %2 : vector<1x2x256xf32> to vector<2x256xf32>
    %4 = vector.extract_strided_slice %3 {offsets = [0, 0], sizes = [1, 256], strides = [1, 1]} : vector<2x256xf32> to vector<1x256xf32>
    %5 = vector.extract_strided_slice %3 {offsets = [1, 0], sizes = [1, 256], strides = [1, 1]} : vector<2x256xf32> to vector<1x256xf32>
    %c0_5 = arith.constant 0 : index
    %6 = memref.load %arg9[%c0_5] : memref<1xf32, #tpu.memory_space<smem>>
    %c0_6 = arith.constant 0 : index
    %c0_7 = arith.constant 0 : index
    %7 = vector.load %arg4[%c0_6, %c0_7] : memref<8x16xf32, #tpu.memory_space<vmem>>, vector<8x16xf32>
    %cst = arith.constant dense<0.000000e+00> : vector<8x256xf32>
    %8 = tpu.matmul %7, %1, %cst {dimension_numbers = #tpu.dot_dimension_numbers<[1], [0], [0], [1], [0, 0, 1, 1], [], []>} : vector<8x16xf32>, vector<16x256xf32>, vector<8x256xf32> -> vector<8x256xf32>
    %c0_8 = arith.constant 0 : index
    %c0_9 = arith.constant 0 : index
    %9 = vector.load %arg5[%c0_8, %c0_9] : memref<8x1xf32, #tpu.memory_space<vmem>>, vector<8x1xf32>
    %10 = vector.broadcast %9 : vector<8x1xf32> to vector<8x256xf32>
    %11 = arith.mulf %8, %10 : vector<8x256xf32>
    %c0_10 = arith.constant 0 : index
    %c0_11 = arith.constant 0 : index
    %12 = vector.load %arg6[%c0_10, %c0_11] : memref<8x1xf32, #tpu.memory_space<vmem>>, vector<8x1xf32>
    %13 = vector.broadcast %12 : vector<8x1xf32> to vector<8x256xf32>
    %14 = arith.addf %11, %13 : vector<8x256xf32>
    %cst_12 = arith.constant 0.000000e+00 : f32
    %15 = vector.broadcast %cst_12 : f32 to vector<8x256xf32>
    %16 = arith.maximumf %14, %15 : vector<8x256xf32>
    %c0_13 = arith.constant 0 : index
    %c0_14 = arith.constant 0 : index
    %17 = vector.load %arg7[%c0_13, %c0_14] : memref<8x8xf32, #tpu.memory_space<vmem>>, vector<8x8xf32>
    %cst_15 = arith.constant dense<0.000000e+00> : vector<8x256xf32>
    %18 = tpu.matmul %17, %16, %cst_15 {dimension_numbers = #tpu.dot_dimension_numbers<[1], [0], [0], [1], [0, 0, 1, 1], [], []>} : vector<8x8xf32>, vector<8x256xf32>, vector<8x256xf32> -> vector<8x256xf32>
    %c0_16 = arith.constant 0 : index
    %c0_17 = arith.constant 0 : index
    %19 = vector.load %arg8[%c0_16, %c0_17] : memref<8x1xf32, #tpu.memory_space<vmem>>, vector<8x1xf32>
    %20 = vector.broadcast %19 : vector<8x1xf32> to vector<8x256xf32>
    %21 = arith.addf %18, %20 : vector<8x256xf32>
    %cst_18 = arith.constant dense<0xFF800000> : vector<256xf32>
    %22 = vector.multi_reduction <maximumf>, %21, %cst_18 [0] : vector<8x256xf32> to vector<256xf32>
    %23 = vector.shape_cast %22 : vector<256xf32> to vector<1x256xf32>
    %24 = vector.broadcast %23 : vector<1x256xf32> to vector<8x256xf32>
    %25 = arith.subf %21, %24 : vector<8x256xf32>
    %26 = math.exp %25 : vector<8x256xf32>
    %cst_19 = arith.constant dense<0.000000e+00> : vector<256xf32>
    %27 = vector.multi_reduction <add>, %26, %cst_19 [0] : vector<8x256xf32> to vector<256xf32>
    %28 = vector.shape_cast %27 : vector<256xf32> to vector<1x256xf32>
    %29 = tpu.reciprocal %28 {approx = true} : vector<1x256xf32> -> vector<1x256xf32>
    %30 = math.log %28 : vector<1x256xf32>
    %31 = arith.mulf %26, %25 : vector<8x256xf32>
    %cst_20 = arith.constant dense<0.000000e+00> : vector<256xf32>
    %32 = vector.multi_reduction <add>, %31, %cst_20 [0] : vector<8x256xf32> to vector<256xf32>
    %33 = vector.shape_cast %32 : vector<256xf32> to vector<1x256xf32>
    %34 = arith.mulf %33, %29 : vector<1x256xf32>
    %35 = arith.subf %30, %34 : vector<1x256xf32>
    %cst_21 = arith.constant 1.44269502 : f32
    %36 = vector.broadcast %cst_21 : f32 to vector<1x256xf32>
    %37 = arith.mulf %35, %36 : vector<1x256xf32>
    %38 = arith.addf %4, %37 : vector<1x256xf32>
    %39 = vector.broadcast %6 : f32 to vector<1x256xf32>
    %40 = arith.cmpf olt, %38, %39 : vector<1x256xf32>
    %cst_22 = arith.constant 5.000000e-01 : f32
    %41 = vector.broadcast %cst_22 : f32 to vector<1x256xf32>
    %42 = arith.cmpf ogt, %5, %41 : vector<1x256xf32>
    %43 = arith.andi %40, %42 : vector<1x256xi1>
    %c0_23 = arith.constant 0 : index
    %c0_24 = arith.constant 0 : index
    %c0_25 = arith.constant 0 : index
    %44 = vector.load %arg10[%c0_23, %c0_24, %c0_25] : memref<1x2x256xf32, #tpu.memory_space<vmem>>, vector<1x1x256xf32>
    %45 = vector.shape_cast %44 : vector<1x1x256xf32> to vector<1x256xf32>
    %46 = vector.shape_cast %38 : vector<1x256xf32> to vector<1x1x256xf32>
    tpu.vector_store %arg10[%c0_23, %c0_24, %c0_25], %46 {strides = array<i32>} : memref<1x2x256xf32, #tpu.memory_space<vmem>>, vector<1x1x256xf32>,
    %47 = arith.extui %43 : vector<1x256xi1> to vector<1x256xi32>
    %48 = arith.sitofp %47 : vector<1x256xi32> to vector<1x256xf32>
    %c0_26 = arith.constant 0 : index
    %c1 = arith.constant 1 : index
    %c0_27 = arith.constant 0 : index
    %49 = vector.load %arg10[%c0_26, %c1, %c0_27] : memref<1x2x256xf32, #tpu.memory_space<vmem>>, vector<1x1x256xf32>
    %50 = vector.shape_cast %49 : vector<1x1x256xf32> to vector<1x256xf32>
    %51 = vector.shape_cast %48 : vector<1x256xf32> to vector<1x1x256xf32>
    tpu.vector_store %arg10[%c0_26, %c1, %c0_27], %51 {strides = array<i32>} : memref<1x2x256xf32, #tpu.memory_space<vmem>>, vector<1x1x256xf32>,
    return
  }
  func.func @transform_0(%arg0: i32, %arg1: i32) -> (i32, i32, i32) {
    %c0_i32 = arith.constant 0 : i32
    %c0_i32_0 = arith.constant 0 : i32
    return %arg0, %c0_i32, %arg1 : i32, i32, i32
  }
  func.func @transform_1(%arg0: i32, %arg1: i32) -> (i32, i32, i32) {
    %c0_i32 = arith.constant 0 : i32
    %c0_i32_0 = arith.constant 0 : i32
    return %arg0, %c0_i32, %arg1 : i32, i32, i32
  }
  func.func @transform_2(%arg0: i32, %arg1: i32) -> (i32, i32) {
    %c0_i32 = arith.constant 0 : i32
    %c0_i32_0 = arith.constant 0 : i32
    %c0_i32_1 = arith.constant 0 : i32
    return %c0_i32, %c0_i32_0 : i32, i32
  }
  func.func @transform_3(%arg0: i32, %arg1: i32) -> (i32, i32) {
    %c0_i32 = arith.constant 0 : i32
    %c0_i32_0 = arith.constant 0 : i32
    %c0_i32_1 = arith.constant 0 : i32
    return %c0_i32, %c0_i32_0 : i32, i32
  }
  func.func @transform_4(%arg0: i32, %arg1: i32) -> (i32, i32) {
    %c0_i32 = arith.constant 0 : i32
    %c0_i32_0 = arith.constant 0 : i32
    %c0_i32_1 = arith.constant 0 : i32
    return %c0_i32, %c0_i32_0 : i32, i32
  }
  func.func @transform_5(%arg0: i32, %arg1: i32) -> (i32, i32) {
    %c0_i32 = arith.constant 0 : i32
    %c0_i32_0 = arith.constant 0 : i32
    %c0_i32_1 = arith.constant 0 : i32
    return %c0_i32, %c0_i32_0 : i32, i32
  }
  func.func @transform_6(%arg0: i32, %arg1: i32) -> (i32, i32) {
    %c0_i32 = arith.constant 0 : i32
    %c0_i32_0 = arith.constant 0 : i32
    %c0_i32_1 = arith.constant 0 : i32
    return %c0_i32, %c0_i32_0 : i32, i32
  }
  func.func @transform_7(%arg0: i32, %arg1: i32) -> i32 {
    %c0_i32 = arith.constant 0 : i32
    %c0_i32_0 = arith.constant 0 : i32
    return %c0_i32 : i32
  }
  func.func @transform_8(%arg0: i32, %arg1: i32) -> (i32, i32, i32) {
    %c0_i32 = arith.constant 0 : i32
    %c0_i32_0 = arith.constant 0 : i32
    return %arg0, %c0_i32, %arg1 : i32, i32, i32
  }
}

</mosaic_0001>

<bundles_post_ra>
// kernel: tpu_custom_call.1
= control target key start
LH: loop header
LB: loop body
LE: loop exit
PB: predicated region body
PF: predicated region fallthrough
CT: control target
= control target key end

     0   :  { %s1266_s0 = inlined_call_operand.hbm [shape: f32[2,16,256], index: 0, kind: input, shape index: {}]   ;;  %s1267_s1 = inlined_call_operand.vmem [shape: f32[2,2,256], index: 1, kind: input, shape index: {}]   ;;  %s1268_s2 = inlined_call_operand.vmem [shape: f32[8,16], index: 2, kind: input, shape index: {}]   ;;  %s1269_s3 = inlined_call_operand.vmem [shape: f32[8,1], index: 3, kind: input, shape index: {}]   ;;  %s1270_s4 = inlined_call_operand.vmem [shape: f32[8,1], index: 4, kind: input, shape index: {}]   ;;  %s1271_s5 = inlined_call_operand.vmem [shape: f32[8,8], index: 5, kind: input, shape index: {}]   ;;  %s1272_s6 = inlined_call_operand.vmem [shape: f32[8,1], index: 6, kind: input, shape index: {}]   ;;  %s1273_s7 = inlined_call_operand.<no memory space> [shape: f32[1], index: 7, kind: input, shape index: {}]   ;;  %s1274_s8 = inlined_call_operand.hbm [shape: f32[2,2,256], index: 8, kind: output, shape index: {}]  }
   0x1   :  { %13 = sst [smem:[#allocation2]] %s1273_s7 }
   0x2   :  { %14 = vsyncpa [#allocation4], 0 }
   0x3   :  { %16 = vsyncpa [#allocation4 + $0x1], 0 }
   0x4   :  { %17 = vsyncpa [#allocation5], 0 }
   0x5   :  { %19 = vsyncpa [#allocation5 + $0x1], 0  ;;  %s1066_s29 = smov 0   ;;  %s1068_s30 = smov 0  }
   0x6   :  { %s1070_s9 = smov 0   ;;  %s1072_s10 = smov 0  }
   0x7   :  { %s1074_s11 = smov 0   ;;  %s1076_s12 = smov 0  }
   0x8 LB: > { %s785_s7 = sadd.s32 4294967295, %s1008_s12   ;;  %s786_s13 = sadd.s32 4294967294, %s1008_s12   ;;  %s1008_s12 = sphi %s1076_s12, %s25_s12   ;;  %s1004_s11 = sphi %s1074_s11, %s1289_s11   ;;  %s1000_s10 = sphi %s1072_s10, %s1288_s10   ;;  %s996_s9 = sphi %s1070_s9, %s1287_s9   ;;  %s992_s30 = sphi %s1068_s30, %s1286_s30   ;;  %s988_s29 = sphi %s1066_s29, %s1285_s29  }
   0x9   : > { %s37_s14 = sadd.s32 1, %s1004_s11  ;;  %s46_s15 = sadd.s32 1, %s996_s9 }
   0xa   : > { %p39_p0 = scmp.ge.s32.totalorder %s37_s14, 2  ;;  %p53_p1 = scmp.ne.s32.totalorder %s996_s9, %s992_s30 }
   0xb   : > { %p54_p2 = scmp.eq.s32.totalorder %s1008_s12, 0  ;;  %p59_p3 = scmp.ne.s32.totalorder %s992_s30, %s988_s29 }
   0xc   : > { %s1291_s14 = smov (%p39_p0, %s37_s14), 0  ;;  %p60_p5 = scmp.eq.s32.totalorder %s785_s7, 0 }
   0xd   : > { %p1107_p4 = por %p54_p2, %p53_p1  ;;  %s41_s17 = ssub.s32 %s1004_s11, %s1291_s14 }
   0xe   : > { %p239_p6 = scmp.eq.s32.totalorder %s785_s7, 1  ;;  %p44_p7 = scmp.eq.s32.totalorder %s41_s17, 0 }
   0xf   : > { %p1113_p8 = por %p60_p5, %p59_p3  ;;  %p245_p10 = scmp.eq.s32.totalorder %s786_s13, 1 }
  0x10   : > { %p1117_p9 = por %p239_p6, %p53_p1  ;;  %p826_p13 = scmp.lt.s32.totalorder %s1008_s12, 2 }
  0x11   : > { %s1122_s20 = scalar_select %p44_p7, %s996_s9, %s46_s15  }
  0x12   : > { %s1278_s19 = scalar_select %p1117_p9, 1, 0 }
  0x13   : > { %p1124_p11 = por %p245_p10, %p59_p3  ;;  %s283_s22 = sand.u32 1, %s996_s9  }
  0x14   : > { %s789_s23 = sshll.u32 %s283_s22, 5  ;;  %s807_s24 = sshll.u32 %s1004_s11, 9 }
  0x15   : > { %s1279_s21 = scalar_select %p1124_p11, 1, 0 }
  0x16   : > { %s1135_s27 = scalar_lea.hbm %s1266_s0, %s807_s24  ;;  %s287_s28 = scalar_lea.vmem [#allocation3], %s789_s23 }
  0x17   : > { %s296_s7 = sshll.u32 %s287_s28, 4  ;;  %p1141_p0 = pnand %p826_p13, %p1107_p4  ;;  %s1137_s7 = int_to_ptr.vmem [resolvable:$true] %s296_s7 }
  0x18   : > { %s1146_s15 = scalar_lea.sflag [#allocation4], %s283_s22  ;;  %s896_s17 = scalar_lea.hbm %s1135_s27, 512 }
  0x19   : > { %p897_p2 = scmp.ne.s32.totalorder %s1135_s27, %s896_s17  ;;  %p898_p3 = pneg %p1141_p0 }
  0x1a   : > { %s901_s16 = scalar_lea.hbm %s1266_s0, 1024  ;;  %p902_p4 = scmp.lt.u32.totalorder %s1135_s27, %s1266_s0 }
  0x1b   : > { %p899_p5 = pnand %p898_p3, %p897_p2  ;;  %p903_p7 = scmp.lt.u32.totalorder %s901_s16, %s896_s17 }
  0x1c   : > { %p905_p13 = scmp.lt.u32.totalorder %s896_s17, %s1135_s27 }
  0x1d   : > { %p900_p6 = pneg %p899_p5  ;;  %p904_p10 = por %p903_p7, %p902_p4 }
  0x1f   : > { %p906_p12 = por %p905_p13, %p904_p10 }
  0x21   : > { %p907_p1 = pnand %p906_p12, %p900_p6 }
  0x23   : > { %910 = shalt.err (!%p907_p1)
}
  0x24   : > { %s911_s22 = scalar_lea.vmem %s1137_s7, 512  ;;  %s1010_s28 = smov [#allocation3]  }
  0x25   : > { %p912_p2 = scmp.ne.s32.totalorder %s1137_s7, %s911_s22  ;;  %s916_s23 = sshll.u32 %s1010_s28, 4  ;;  %s917_s23 = int_to_ptr.vmem [resolvable:$false] %s916_s23 }
  0x26   : > { %s918_s24 = scalar_lea.vmem %s917_s23, 1024  ;;  %p919_p9 = scmp.lt.s32.totalorder %s1137_s7, %s917_s23 }
  0x27   : > { %p914_p5 = pnand %p912_p2, %p898_p3  ;;  %p920_p4 = scmp.lt.s32.totalorder %s918_s24, %s911_s22 }
  0x29   : > { %p915_p11 = pneg %p914_p5  ;;  %p921_p7 = por %p920_p4, %p919_p9 }
  0x2b   : > { %p922_p10 = pnand %p921_p7, %p915_p11 }
  0x2d   : > { %925 = shalt.err (!%p922_p10)
}
  0x2e   : > { %s1011_s17 = smov 256   ;;  %s1012_s16 = smov 16  }
  0x2f   : > { %821 = dma.hbm_to_vmem [thread:$0]  (!%p1141_p0), %s1135_s27, 512, %s1137_s7, %s1146_s15, %s1011_s17, %s1011_s17, %s1012_s16  }
  0x30   : > { %p317_p12 = scmp.lt.s32.totalorder %s1008_s12, 3  ;;  %p1281_p1 = scmp.ge.s32.totalorder %s1008_s12, 1 }
  0x32   : > { %p318_p3 = pnand %p1281_p1, %p317_p12 }
  0x33   : > { %s1178_s25 = sand.u32 (!%p318_p3), 1, %s992_s30  }
  0x34   : > { %321 = sbr.rel (%p318_p3) target bundleno = 586 (0x24a), region = 52  ;;  %s793_s26 = sshll.u32 (!%p318_p3), %s1178_s25, 5 }
  0x35   : > { %s324_s22 = scalar_lea.sflag (!%p318_p3), [#allocation4], %s1178_s25  ;;  %s327_s28 = scalar_lea.vmem (!%p318_p3), [#allocation3], %s793_s26 }
  0x3b   : > { %979 = dma.done.wait (%p1113_p8), %s324_s22, 512  }
  0x3c   : > { %981 = vsyncadd (%p1113_p8), %s324_s22, 4294966784  ;;  %v1013_v0 = vmov 0.0   ;;  %v1014_v1 = vmov 0   ;;  %v382_v2 = vld [vmem:[%s327_s28 + $0x8] sm:$0xff]  ;;  %v384_v3 = vld [vmem:[%s327_s28 + $0x18] sm:$0xff]  ;;  %vm388_vm0 = vcmask 130048  }
  0x3d   : > { %456 = vmatprep.mubr.f32.mxu0 %v1013_v0  ;;  %882 = vset.pattern.permute.xlu0 %v1014_v1  ;;  %v381_v4 = vld [vmem:[%s327_s28] sm:$0xff]  ;;  %v810_v5 = vpack.c.bf16 %v384_v3, %v382_v2  ;;  %v383_v6 = vld [vmem:[%s327_s28 + $0x10] sm:$0xff]  ;;  %vm488_vm1 = vcmask 64512   ;;  %p371_p8 = scmp.lt.s32.totalorder %s1000_s10, 1  ;;  %s386_s13 = sld [smem:[#allocation2]] }
  0x3e   : > { %556 = vmatprep.mubr.f32.mxu1 %v1013_v0  ;;  %883 = vset.pattern.permute.xlu1 %v1014_v1  ;;  %v812_v7 = vpack.c.bf16 %v383_v6, %v381_v4  ;;  %v463_v8 = vld [vmem:[%s1269_s3] sm:$0xff]  ;;  %s794_s15 = sshll.u32 %s1178_s25, 2  ;;  %s809_s23 = sshll.u32 %s1000_s10, 6 }
  0x3f   : > { %811 = vmatprep.subr.bf16.mxu0 %v810_v5  ;;  %466 = vperm.xlu0 %882, %v463_v8   ;;  %v387_v9 = vld [vmem:[%s1268_s2] sm:$0xff]  ;;  %s372_s22 = scalar_select %p371_p8, %s1000_s10, 1 }
  0x40   : > { %813 = vmatpush1.bf16.msra.mxu0 %v812_v7  ;;  %v471_v10 = vld [vmem:[%s1270_s4] sm:$0xff]  ;;  %s368_s24 = scalar_lea.vmem [#allocation6], %s794_s15  ;;  %p1282_p11 = scmp.ne.s32.totalorder %s1278_s19, 0 }
  0x41   : > { %v482_v11 = vld [vmem:[%s1272_s6] sm:$0xff]  ;;  %s808_s28 = sshll.u32 %s372_s22, 2  ;;  %s683_s17 = sshll.u32 %s368_s24, 4  ;;  %s1219_s17 = int_to_ptr.vmem [resolvable:$true] %s683_s17 }
  0x42   : > { %485 = vperm.xlu1 %883, %v482_v11   ;;  %v481_v22 = vld [vmem:[%s1271_s5] sm:$0xff]  ;;  %s378_s18 = scalar_lea.vmem %s1267_s1, %s808_s28  ;;  %s1217_s22 = scalar_lea.hbm %s1274_s8, %s809_s23 }
  0x43   : > { %797 = vmatmul.mubr.msk.f32.vlgmr.msra.gmra.mrb[0].mxu0 %vm388_vm0, %v387_v9  ;;  %474 = vperm.xlu0 %882, %v471_v10   ;;  %v1015_v9 = vmov 1983009808   ;;  %s667_s28 = scalar_lea.sflag [#allocation5], %s1178_s25  ;;  %s926_s10 = scalar_lea.vmem %s1219_s17, 64 }
  0x44   : > { %v623_v10 = vunpack.c.l.s4 %v1015_v9  ;;  %p927_p9 = scmp.ne.s32.totalorder %s1219_s17, %s926_s10  ;;  %s1017_s27 = smov [#allocation6]  }
  0x45   : > { %s930_s7 = sshll.u32 %s1017_s27, 4  ;;  %s931_s7 = int_to_ptr.vmem [resolvable:$false] %s930_s7 }
  0x46   : > { %p928_p0 = pnand %p927_p9, %p1282_p11  ;;  %p933_p13 = scmp.lt.s32.totalorder %s1219_s17, %s931_s7 }
  0x48   : > { %p929_p6 = pneg %p928_p0 }
  0xbe   : > { %v467_v12 = vpop.permute.xlu0 %466 }
  0xc1   : > { %v486_v23 = vpop.permute.xlu1 %485 }
  0xc2   : > { %v475_v16 = vpop.permute.xlu0 %474 }
 0x116   : > { %v458_v13 = vpop.f32.mrb[0].mxu0 }
 0x117   : > { %v469_v14 = vmul.f32 %v467_v12, %v458_v13  ;;  %v460_v15 = vpop.f32.mrb[1].mxu0  ;;  %v625_v13 = vlaneseq }
 0x118   : > { %v470_v17 = vmul.f32 %v467_v12, %v460_v15  ;;  %v385_v12 = vld [vmem:[%s378_s18] sm:$0xf]  ;;  %s932_s18 = scalar_lea.vmem %s931_s7, 128 }
 0x119   : > { %v477_v18 = vadd.f32 %v475_v16, %v469_v14  ;;  %vm633_vm2 = vcmp.gt.f32.partialorder %v385_v12, 0.5  ;;  %vm650_vm4 = vcmp.lt.s32.totalorder %v625_v13, 256  ;;  %p934_p2 = scmp.lt.s32.totalorder %s932_s18, %s926_s10 }
 0x11a   : > { %v478_v19 = vadd.f32 %v475_v16, %v470_v17 }
 0x11b   : > { %v479_v21 = vmax.f32 %v477_v18, 0.0  ;;  %p935_p5 = por %p934_p2, %p933_p13 }
 0x11c   : > { %v480_v20 = vmax.f32 %v478_v19, 0.0 }
 0x11d   : > { %p936_p4 = pnand %p935_p5, %p929_p6 }
 0x11e   : > { %492 = vmatprep.subr.mxu1 %v480_v20 }
 0x11f   : > { %493 = vmatpush1.msra.mxu1 %v479_v21  ;;  %v624_v21 = vunpack.c.0.s8 %v623_v10 }
 0x120   : > { %798 = vmatmul.mubr.msk.f32.vlgmr.msra.gmra.mrb[0].mxu1 %vm488_vm1, %v481_v22 }
 0x1f3   : > { %v558_v24 = vpop.f32.mrb[0].mxu1 }
 0x1f4   : > { %v559_v25 = vadd.f32 %v558_v24, %v486_v23  ;;  %v560_v26 = vpop.f32.mrb[1].mxu1  ;;  %v626_v24 = vshrl.u32 %v625_v13, 7 }
 0x1f5   : > { %v561_v27 = vadd.f32 %v560_v26, %v486_v23 }
 0x1f6   : > { %v563_v28 = vrot.slane %v559_v25, 4 }
 0x1f7   : > { %v569_v29 = vrot.slane %v561_v27, 4 }
 0x1f8   : > { %v564_v30 = vmax.f32 %v559_v25, %v563_v28 }
 0x1f9   : > { %v570_v31 = vmax.f32 %v561_v27, %v569_v29  ;;  %v634_v29 = vsel %vm633_vm2, 1, %v1014_v1 }
 0x1fa   : > { %v565_v32 = vrot.slane %v564_v30, 2 }
 0x1fb   : > { %v571_v33 = vrot.slane %v570_v31, 2 }
 0x1fc   : > { %v566_v34 = vmax.f32 %v564_v30, %v565_v32 }
 0x1fd   : > { %v572_v35 = vmax.f32 %v570_v31, %v571_v33  ;;  %v627_v31 = vsub.s32 %v624_v21, %v626_v24  ;;  %v799_v33 = vrot.slane %v634_v29, 9 }
 0x1fe   : > { %v567_v36 = vrot.slane %v566_v34, 1 }
 0x1ff   : > { %v573_v37 = vrot.slane %v572_v35, 1  ;;  %vm637_vm3 = vcmp.ne.s32.totalorder %v799_v33, 0 }
 0x200   : > { %v568_v38 = vmax.f32 %v566_v34, %v567_v36 }
 0x201   : > { %v574_v39 = vmax.f32 %v572_v35, %v573_v37  ;;  %v631_v37 = vstv %s386_s13 }
 0x202   : > { %v575_v40 = vsub.f32 %v559_v25, %v568_v38  ;;  %v1016_v25 = vmov 1966171168  }
 0x203   : > { %v576_v41 = vsub.f32 %v561_v27, %v574_v39  ;;  %v641_v26 = vunpack.c.l.s4 %v1016_v25 }
 0x204   : > { %v577_v42 = vmul.f32 1.442695, %v575_v40 }
 0x205   : > { %v579_v43 = vmul.f32 1.442695, %v576_v41  ;;  %v642_v32 = vunpack.c.0.s8 %v641_v26 }
 0x206   : > { %884 = vpow2.f32 %v577_v42 }
 0x207   : > { %886 = vpow2.f32 %v579_v43  ;;  %v645_v36 = vsub.s32 %v642_v32, %v626_v24 }
 0x210   : > { %v885_v44 = vpop.eup %884 }
 0x211   : > { %v887_v45 = vpop.eup %886  ;;  %v581_v46 = vrot.slane %v885_v44, 4  ;;  %v599_v47 = vmul.f32 %v885_v44, %v575_v40 }
 0x212   : > { %v587_v48 = vrot.slane %v887_v45, 4  ;;  %v600_v49 = vmul.f32 %v887_v45, %v576_v41 }
 0x213   : > { %v582_v50 = vadd.f32 %v885_v44, %v581_v46  ;;  %v601_v51 = vrot.slane %v599_v47, 4 }
 0x214   : > { %v588_v52 = vadd.f32 %v887_v45, %v587_v48  ;;  %v607_v53 = vrot.slane %v600_v49, 4 }
 0x215   : > { %v583_v54 = vrot.slane %v582_v50, 2  ;;  %v602_v55 = vadd.f32 %v601_v51, %v599_v47 }
 0x216   : > { %v589_v56 = vrot.slane %v588_v52, 2  ;;  %v608_v59 = vadd.f32 %v607_v53, %v600_v49 }
 0x217   : > { %v584_v57 = vadd.f32 %v583_v54, %v582_v50  ;;  %v603_v61 = vrot.slane %v602_v55, 2 }
 0x218   : > { %v590_v58 = vadd.f32 %v589_v56, %v588_v52  ;;  %v609_v3 = vrot.slane %v608_v59, 2 }
 0x219   : > { %v585_v60 = vrot.slane %v584_v57, 1  ;;  %v604_v4 = vadd.f32 %v603_v61, %v602_v55 }
 0x21a   : > { %v591_v62 = vrot.slane %v590_v58, 1  ;;  %v610_v5 = vadd.f32 %v609_v3, %v608_v59 }
 0x21b   : > { %v586_v63 = vadd.f32 %v585_v60, %v584_v57  ;;  %v605_v6 = vrot.slane %v604_v4, 1 }
 0x21c   : > { %v592_v2 = vadd.f32 %v591_v62, %v590_v58  ;;  %v611_v7 = vrot.slane %v610_v5, 1 }
 0x21d   : > { %888 = vrcp.f32 %v586_v63  ;;  %v606_v8 = vadd.f32 %v605_v6, %v604_v4 }
 0x21e   : > { %890 = vlog2.f32 %v586_v63  ;;  %v612_v16 = vadd.f32 %v611_v7, %v610_v5 }
 0x21f   : > { %892 = vrcp.f32 %v592_v2 }
 0x220   : > { %894 = vlog2.f32 %v592_v2 }
 0x227   : > { %v889_v11 = vpop.eup %888 }
 0x228   : > { %v891_v14 = vpop.eup %890  ;;  %v613_v15 = vmul.f32 %v889_v11, %v606_v8 }
 0x229   : > { %v893_v17 = vpop.eup %892  ;;  %v596_v18 = vmul.f32 0.6931472, %v891_v14 }
 0x22a   : > { %v895_v19 = vpop.eup %894  ;;  %v614_v20 = vmul.f32 %v893_v17, %v612_v16 }
 0x22b   : > { %v615_v22 = vsub.f32 %v596_v18, %v613_v15  ;;  %v598_v23 = vmul.f32 0.6931472, %v895_v19 }
 0x22d   : > { %v617_v27 = vmul.f32 1.442695, %v615_v22  ;;  %v616_v28 = vsub.f32 %v598_v23, %v614_v20 }
 0x22f   : > { %v618_v30 = vmul.f32 1.442695, %v616_v28 }
 0x231   : > { %v621_v34 = vcombine.low %v617_v27, %v618_v30 }
 0x233   : > { %v628_v35 = vrot.slane %v621_v34, %v627_v31 }
 0x235   : > { %v630_v38 = vadd.f32 %v628_v35, %v385_v12 }
 0x237   : > { %vm632_vm5 = vcmp.lt.f32.partialorder %v630_v38, %v631_v37  ;;  %v646_v39 = vrot.slane %v630_v38, %v645_v36 }
 0x238   : > { %vm638_vm6 = vmand %vm632_vm5, %vm637_vm3 }
 0x239   : > { %652 = vst.msk [vmem:[%s368_s24] ss:$2 sm:$0x3] %vm650_vm4, %v646_v39  ;;  %v800_v1 = vsel %vm638_vm6, 1.0, %v1013_v0 }
 0x23a   : > { %v662_v40 = vrot.slane %v800_v1, %v645_v36 }
 0x23c   : > { %801 = vst.msk [vmem:[%s368_s24 + $0x1] ss:$2 sm:$0x3] %vm650_vm4, %v662_v40 }
 0x23d   : > { %939 = shalt.err (!%p936_p4)
}
 0x23e   : > { %s940_s25 = scalar_lea.hbm %s1217_s22, 64  ;;  %s944_s23 = scalar_lea.hbm %s1274_s8, 128 }
 0x23f   : > { %p941_p7 = scmp.ne.s32.totalorder %s1217_s22, %s940_s25  ;;  %p945_p1 = scmp.lt.u32.totalorder %s1217_s22, %s1274_s8 }
 0x240   : > { %p946_p3 = scmp.lt.u32.totalorder %s944_s23, %s940_s25  ;;  %p948_p9 = scmp.lt.u32.totalorder %s940_s25, %s1217_s22 }
 0x241   : > { %p942_p10 = pnand %p941_p7, %p1282_p11 }
 0x242   : > { %p947_p8 = por %p946_p3, %p945_p1 }
 0x243   : > { %p943_p12 = pneg %p942_p10 }
 0x244   : > { %p949_p0 = por %p948_p9, %p947_p8 }
 0x246   : > { %p950_p6 = pnand %p949_p0, %p943_p12 }
 0x248   : > { %953 = shalt.err (!%p950_p6)
}
 0x249   : > { %816 = dma.vmem_to_hbm [thread:$0]  (%p1282_p11), %s1219_s17, 64, %s1217_s22, %s667_s28  }
 0x24a PF: > { %s695_s26 = sand.u32 1, %s988_s29   ;;  %p1283_p13 = scmp.ne.s32.totalorder %s1279_s21, 0 }
 0x24b   : > { %p1284_p2 = scmp.ge.s32.totalorder %s1008_s12, 2  ;;  %s696_s10 = scalar_lea.sflag [#allocation5], %s695_s26 }
 0x24d   : > { %p823_p5 = pnand %p1284_p2, %p1283_p13 }
 0x24f   : > { %983 = dma.done.wait (!%p823_p5), %s696_s10, 64  }
 0x250   : > { %985 = vsyncadd (!%p823_p5), %s696_s10, 4294967232  ;;  %s25_s12 = sadd.s32 1, %s1008_s12   ;;  %s1285_s29 = smov %s992_s30 }
 0x251   : > { %p22_p4 = scmp.ge.s32.totalorder %s25_s12, 4   ;;  %s1286_s30 = smov %s996_s9 }
 0x252   : > { %s1287_s9 = smov %s1122_s20  ;;  %s1288_s10 = smov %s1004_s11 }
 0x253   : > { %s1289_s11 = smov %s1291_s14  ;;  %24 = sbr.rel (!%p22_p4) target bundleno = 8 (0x8), region = 101 }
 0x25a   :  { %701 = vsyncpa [#allocation4], 1 }
 0x25b   :  { %703 = vsyncpa [#allocation4 + $0x1], 1 }
 0x25c   :  { %704 = vsyncpa [#allocation5], 1 }
 0x25d   :  { %706 = vsyncpa [#allocation5 + $0x1], 1 }

</bundles_post_ra>
